<compile_context>
chip_gen: v5e
topology: v5e:2x2
jax: 0.10.0
libtpu: 0.0.40
codegen_flags: <defaults>
</compile_context>

<pallas_src>
import functools
import math

import jax
import jax.numpy as jnp
from jax.experimental import pallas as pl
from jax.experimental.pallas import tpu as pltpu


# ----------------------------- per-generation tuning -------------------------
def _device_kind():
    try:
        return jax.devices()[0].device_kind.lower()
    except Exception:
        return ""


_KIND = _device_kind()
_IS_V7 = any(s in _KIND for s in ("v7", "tpu7", "tpu 7"))
_IS_V6 = "v6" in _KIND

_LANE = 512  # lane-dense last dim (multiple of 128) -> unmasked full-width stores

if _IS_V7 or _IS_V6:
    # 2 MiB per array per block; 4 arrays x 2 buffers = 16 MiB, inside the
    # 32 MiB scoped-VMEM default (and well clear of v7x's 64 MiB physical).
    _MAX_BLOCK_BYTES = 2 << 20
else:
    # v5e: 1 MiB per array -> 8 MiB double-buffered, safe under the 16 MiB
    # scoped-VMEM default; per-step overhead is already <10% at 0.82 TB/s.
    _MAX_BLOCK_BYTES = 1 << 20


def _plan(total, lane=_LANE, max_block_bytes=_MAX_BLOCK_BYTES):
    """Choose the flattened (rows, lane) slab and per-block row count.

    Guarantees: rows and block_rows are multiples of 8 (sublane-dense),
    lane is a multiple of 128 (lane-dense), rows % block_rows == 0, and on
    v7x multi-block slabs the grid is even so CORE_PARALLEL splits cleanly.
    """
    max_rows = max(8, (max_block_bytes // (4 * lane)) // 8 * 8)
    rows = -(-total // lane)                 # ceil div
    rows = max(8, -(-rows // 8) * 8)         # sublane-dense
    if rows <= max_rows:
        block_rows = rows                    # single block == full (padded) array
    else:
        block_rows = max_rows
        quantum = 2 * block_rows if _IS_V7 else block_rows
        rows = -(-rows // quantum) * quantum
    return rows, lane, block_rows


def _dim_semantics(grid_size):
    if _IS_V7 and grid_size >= 2:
        return (pltpu.CORE_PARALLEL,)        # shard the row loop across both TCs
    return ("parallel",)


# --------------------------------- kernels -----------------------------------
def _first_step_kernel(x_ref, out_ref, tot_ref):
    x = x_ref[...]
    tot_ref[...] = x
    # t == 0 branch: last = 0, tot = x, out = relu(x/1)*1 = relu(x).
    out_ref[...] = jnp.maximum(x, 0.0)


def _step_kernel(x_ref, tot_ref, out_ref, new_tot_ref):
    tot_old = tot_ref[...]
    tot_new = tot_old + x_ref[...]
    new_tot_ref[...] = tot_new
    # relu(tot/t)*t == relu(tot) by positive homogeneity (t > 0).
    out_ref[...] = jnp.maximum(tot_new, 0.0) - jnp.maximum(tot_old, 0.0)


def _pallas_first_step(x_flat, block_rows):
    M, N = x_flat.shape
    grid = (M // block_rows,)
    spec = pl.BlockSpec((block_rows, N), lambda i: (i, 0))
    return pl.pallas_call(
        _first_step_kernel,
        out_shape=(
            jax.ShapeDtypeStruct((M, N), jnp.float32),
            jax.ShapeDtypeStruct((M, N), jnp.float32),
        ),
        grid_spec=pl.GridSpec(grid=grid, in_specs=[spec], out_specs=(spec, spec)),
        compiler_params=pltpu.CompilerParams(
            dimension_semantics=_dim_semantics(grid[0])),
    )(x_flat)


def _pallas_step(x_flat, tot_flat, block_rows):
    M, N = x_flat.shape
    grid = (M // block_rows,)
    spec = pl.BlockSpec((block_rows, N), lambda i: (i, 0))
    return pl.pallas_call(
        _step_kernel,
        out_shape=(
            jax.ShapeDtypeStruct((M, N), jnp.float32),
            jax.ShapeDtypeStruct((M, N), jnp.float32),
        ),
        grid_spec=pl.GridSpec(grid=grid, in_specs=[spec, spec], out_specs=(spec, spec)),
        # Update the running-sum state in place (tot input -> new_tot output);
        # real because the caller donates tot_flat to the jit.
        input_output_aliases={1: 1},
        compiler_params=pltpu.CompilerParams(
            dimension_semantics=_dim_semantics(grid[0])),
    )(x_flat, tot_flat)


# ---------------------- single-dispatch jitted wrappers -----------------------
def _flatten_for_kernel(x):
    total = math.prod(x.shape) if x.shape else 1
    rows, lane, block_rows = _plan(total)
    padded = rows * lane
    x_flat = jnp.ravel(x).astype(jnp.float32)
    if padded != total:
        x_flat = jnp.pad(x_flat, (0, padded - total))
    return x_flat.reshape(rows, lane), block_rows, total


def _unflatten(out_flat, total, orig_shape):
    out = out_flat.reshape(-1)
    if out.shape[0] != total:
        out = out[:total]
    return out.reshape(orig_shape)


@jax.jit
def _first_step(x):
    """Step 0: out = relu(x), tot = x (1 read / 2 writes, no zero stream)."""
    x_flat, block_rows, total = _flatten_for_kernel(x)
    out_flat, tot_flat = _pallas_first_step(x_flat, block_rows)
    return _unflatten(out_flat, total, x.shape), tot_flat


@functools.partial(jax.jit, donate_argnums=(1,))
def _next_step(x, tot_flat):
    """Steps >= 1: out = relu(tot+x) - relu(tot); tot updated in place."""
    x_flat, block_rows, total = _flatten_for_kernel(x)
    out_flat, new_tot = _pallas_step(x_flat, tot_flat, block_rows)
    return _unflatten(out_flat, total, x.shape), new_tot


# --------------------------------- module ------------------------------------
class ExpCompNeuron:
    """Python-side state carrier mirroring the PyTorch module (func = ReLU).

    Invariant: the running-sum buffer passed to `_next_step` is DONATED; the
    previous `self.tot` array is invalidated after each call and must never be
    read again (this class only ever keeps the freshest buffer).
    """

    def __init__(self):
        self.tot = None    # flattened, padded running sum (f32[rows, lane])
        self.t = 0         # kept for API parity / reset(); not needed by the kernel
        self._shape = None  # shape the state was built for

    def __call__(self, x):
        if self.tot is None:
            self._shape = tuple(x.shape)
            out, self.tot = _first_step(x)
        else:
            if tuple(x.shape) != self._shape:
                raise ValueError(
                    f"exp_comp_neuron state was built for shape {self._shape}, "
                    f"got {tuple(x.shape)}; call reset() before changing shapes.")
            out, self.tot = _next_step(x, self.tot)
        self.t += 1
        return out

    def reset(self):
        self.tot = None
        self.t = 0
        self._shape = None


# ------------------------------- verification --------------------------------
def _reference_step(x, tot, t):
    """Pure-JAX replica of the PyTorch forward (func = ReLU)."""
    if tot is None:
        last = jnp.zeros_like(x)
        tot = x
    else:
        last = jnp.maximum(tot / t, 0.0) * t
        tot = tot + x
    t = t + 1
    now = jnp.maximum(tot / t, 0.0) * t
    return now - last, tot, t


def _run_case(key, shape, n_steps):
    neuron = ExpCompNeuron()
    ref_tot, ref_t = None, 0
    ok = True
    for _ in range(n_steps):
        key, sub = jax.random.split(key)
        x = jax.random.normal(sub, shape, dtype=jnp.float32)
        out = jax.block_until_ready(neuron(x))
        ref_out, ref_tot, ref_t = _reference_step(x, ref_tot, ref_t)
        ok = ok and bool(jnp.allclose(out, ref_out, atol=1e-5, rtol=1e-5))
    return ok, key


if __name__ == "__main__":
    key = jax.random.PRNGKey(0)
    ok = True

    # Primary case: small NCHW input implied by the module's typical use.
    good, key = _run_case(key, (2, 4, 16, 16), n_steps=3)
    ok = ok and good

    # Awkward size: exercises the zero-padding path (total not a lane multiple).
    good, key = _run_case(key, (2, 3, 13, 17), n_steps=2)
    ok = ok and good

    # Larger case: exercises the multi-block / larger-block tiled path.
    good, key = _run_case(key, (4, 8, 128, 128), n_steps=2)
    ok = ok and good

    print("KERNEL_OK" if ok else "KERNEL_MISMATCH")
</pallas_src>

<mosaic_0001>
module attributes {stable_mosaic.version = 11 : i64} {
  func.func @_first_step_kernel(%arg0: i32, %arg1: memref<8x512xf32, #tpu.memory_space<vmem>>, %arg2: memref<8x512xf32, #tpu.memory_space<vmem>>, %arg3: memref<8x512xf32, #tpu.memory_space<vmem>>) attributes {dimension_semantics = [#tpu.dimension_semantics<parallel>], iteration_bounds = array<i64: 1>, scalar_prefetch = 0 : i64, scratch_operands = 0 : i64, tpu.core_type = #tpu.core_type<tc>, window_params = [{transform_indices = @transform_0, window_bounds = array<i64: 8, 512>}, {transform_indices = @transform_1, window_bounds = array<i64: 8, 512>}, {transform_indices = @transform_2, window_bounds = array<i64: 8, 512>}]} {
    %c0 = arith.constant 0 : index
    %c0_0 = arith.constant 0 : index
    %0 = vector.load %arg1[%c0, %c0_0] : memref<8x512xf32, #tpu.memory_space<vmem>>, vector<8x512xf32>
    %c0_1 = arith.constant 0 : index
    %c0_2 = arith.constant 0 : index
    %1 = vector.load %arg3[%c0_1, %c0_2] : memref<8x512xf32, #tpu.memory_space<vmem>>, vector<8x512xf32>
    tpu.vector_store %arg3[%c0_1, %c0_2], %0 {strides = array<i32>} : memref<8x512xf32, #tpu.memory_space<vmem>>, vector<8x512xf32>,
    %cst = arith.constant 0.000000e+00 : f32
    %2 = vector.broadcast %cst : f32 to vector<8x512xf32>
    %3 = arith.maximumf %0, %2 : vector<8x512xf32>
    %c0_3 = arith.constant 0 : index
    %c0_4 = arith.constant 0 : index
    %4 = vector.load %arg2[%c0_3, %c0_4] : memref<8x512xf32, #tpu.memory_space<vmem>>, vector<8x512xf32>
    tpu.vector_store %arg2[%c0_3, %c0_4], %3 {strides = array<i32>} : memref<8x512xf32, #tpu.memory_space<vmem>>, vector<8x512xf32>,
    return
  }
  func.func @transform_0(%arg0: i32) -> (i32, i32) {
    %c0_i32 = arith.constant 0 : i32
    %c0_i32_0 = arith.constant 0 : i32
    return %arg0, %c0_i32 : i32, i32
  }
  func.func @transform_1(%arg0: i32) -> (i32, i32) {
    %c0_i32 = arith.constant 0 : i32
    %c0_i32_0 = arith.constant 0 : i32
    return %arg0, %c0_i32 : i32, i32
  }
  func.func @transform_2(%arg0: i32) -> (i32, i32) {
    %c0_i32 = arith.constant 0 : i32
    %c0_i32_0 = arith.constant 0 : i32
    return %arg0, %c0_i32 : i32, i32
  }
}

</mosaic_0001>

<bundles_post_ra>
// kernel: _first_step.1
= control target key start
LH: loop header
LB: loop body
LE: loop exit
PB: predicated region body
PF: predicated region fallthrough
CT: control target
= control target key end

     0   :  { %s74_s20 = smov [#allocation2]   ;;  %s117_s0 = inlined_call_operand.vmem [shape: f32[8,512], index: 0, kind: input, shape index: {}]   ;;  %s118_s1 = inlined_call_operand.vmem [shape: f32[8,512], index: 1, kind: output, shape index: {0}]   ;;  %s119_s2 = inlined_call_operand.hbm [shape: f32[8,512], index: 2, kind: output, shape index: {1}]  }
   0x1   :  { %v11_v0 = vld [vmem:[%s117_s0] sm:$0xff]  ;;  %v12_v1 = vld [vmem:[%s117_s0 + $0x8] sm:$0xff]  ;;  %v13_v2 = vld [vmem:[%s117_s0 + $0x10] sm:$0xff]  ;;  %s36_s17 = sshll.u32 %s119_s2, 4  ;;  %s34_s21 = sshll.u32 %s74_s20, 4  ;;  %s35_s21 = int_to_ptr.vmem [resolvable:$true] %s34_s21  ;;  %s37_s17 = int_to_ptr.hbm [resolvable:$true] %s36_s17 }
   0x2   :  { %15 = vst [vmem:[#allocation2] sm:$0xff] %v11_v0  ;;  %v14_v3 = vld [vmem:[%s117_s0 + $0x18] sm:$0xff]  ;;  %v19_v4 = vmax.f32 %v11_v0, 0.0  ;;  %v20_v5 = vmax.f32 %v12_v1, 0.0 }
   0x3   :  { %16 = vst [vmem:[#allocation2 + $0x8] sm:$0xff] %v12_v1 }
   0x4   :  { %8 = vsyncpa [#allocation3], 0  ;;  %17 = vst [vmem:[#allocation2 + $0x10] sm:$0xff] %v13_v2  ;;  %v21_v6 = vmax.f32 %v13_v2, 0.0  ;;  %v22_v7 = vmax.f32 %v14_v3, 0.0 }
   0x5   :  { %18 = vst [vmem:[#allocation2 + $0x18] sm:$0xff] %v14_v3 }
   0x6   :  { %23 = vst [vmem:[%s118_s1] sm:$0xff] %v19_v4  ;;  %39 = dma.vmem_to_hbm [thread:$0]  %s35_s21, 512, %s37_s17, [#allocation3]  }
   0x7   :  { %24 = vst [vmem:[%s118_s1 + $0x8] sm:$0xff] %v20_v5 }
   0x8   :  { %25 = vst [vmem:[%s118_s1 + $0x10] sm:$0xff] %v21_v6 }
   0x9   :  { %26 = vst [vmem:[%s118_s1 + $0x18] sm:$0xff] %v22_v7 }
   0xa   :  { %72 = dma.done.wait [#allocation3], 512  }
   0xb   :  { %73 = vsyncadd [#allocation3], 4294966784 }
   0xc   :  { %46 = vsyncpa [#allocation3], 1 }

</bundles_post_ra>
